<compile_context>
chip_gen: v7x
topology: tpu7x:2x2x1
jax: 0.10.0
libtpu: 0.0.40
codegen_flags: <defaults>
</compile_context>

<pallas_src>
import functools

import jax
import jax.numpy as jnp
from jax import lax
from jax.experimental import pallas as pl
from jax.experimental.pallas import tpu as pltpu

_EPS = 1e-12          # F.normalize default eps
_EPS_SQ = _EPS * _EPS

# Tile sizes chosen to fit the tightest VMEM budget (v7x: 64 MiB physical,
# 32 MiB default scoped), counting double buffers:
#   2*(TM + TN)*nfeat*4B + 2*TM*TN*4B + TN*nfeat*4B (cn cache) + f32 temps
#   ≈ 20 MiB at nfeat = 2048.   Also fine on v5e / v6e (128 MiB VMEM).
_TM = 256   # batch tile (multiple of 8)
_TN = 512   # class tile (multiple of 128 -> unmasked, lane-dense vst)


def _coco_kernel(x_ref, c_ref, o_ref, cn_ref, *, alpha):
    """One (class-tile j, batch-tile i) grid step.

    grid = (num_class_tiles, num_batch_tiles). The batch axis is the inner,
    sequential ("arbitrary") axis, so the normalized centers tile can be
    computed once per class tile (when i == 0) and reused from VMEM scratch
    for every batch tile.
    """
    i = pl.program_id(1)  # batch-tile index (inner / sequential axis)

    @pl.when(i == 0)
    def _():
        c = c_ref[...].astype(jnp.float32)                       # (TN, nfeat)
        # 1/max(||c||, eps) == rsqrt(max(||c||^2, eps^2)); rsqrt runs on the EUP.
        inv_c = lax.rsqrt(
            jnp.maximum(jnp.sum(c * c, axis=-1, keepdims=True), _EPS_SQ))
        cn_ref[...] = c * inv_c

    x = x_ref[...].astype(jnp.float32)                           # (TM, nfeat)
    # Fold alpha into the (TM, 1) inverse norm instead of a full-tile multiply.
    inv_x = alpha * lax.rsqrt(
        jnp.maximum(jnp.sum(x * x, axis=-1, keepdims=True), _EPS_SQ))
    xn = x * inv_x

    # Contract on the last dim of both operands (no cn.T materialization);
    # f32 accumulation on the MXU.
    # TODO(synk): optionally cast xn / cn_ref[...] to bf16 here on v6e/v7x for
    # ~3-4x MXU throughput if looser-than-1e-4 precision is acceptable.
    logits = lax.dot_general(
        xn, cn_ref[...],
        dimension_numbers=(((1,), (1,)), ((), ())),
        preferred_element_type=jnp.float32)
    o_ref[...] = logits.astype(o_ref.dtype)


def coco_linear(x, centers, alpha):
    """Pallas implementation of CocoLinear.forward(x, y) (y unused)."""
    batch, nfeat = x.shape
    nclass, nfeat_c = centers.shape
    assert nfeat == nfeat_c

    # Small problems collapse to a single full-array block (no grid overhead);
    # larger ones tile the batch / class axes (nfeat always stays whole so the
    # row-norm reduction is single-pass).
    tm = batch if batch <= _TM else _TM
    tn = nclass if nclass <= _TN else _TN
    grid = (pl.cdiv(nclass, tn), pl.cdiv(batch, tm))  # (class tiles, batch tiles)

    kernel = functools.partial(_coco_kernel, alpha=float(alpha))
    return pl.pallas_call(
        kernel,
        out_shape=jax.ShapeDtypeStruct((batch, nclass), jnp.float32),
        grid_spec=pltpu.PrefetchScalarGridSpec(
            num_scalar_prefetch=0,
            grid=grid,
            in_specs=[
                # x: depends only on the batch-tile index.
                pl.BlockSpec((tm, nfeat), lambda j, i: (i, 0)),
                # centers: same block across the inner batch axis -> stays
                # resident in VMEM; DMA'd once per class tile.
                pl.BlockSpec((tn, nfeat), lambda j, i: (j, 0)),
            ],
            out_specs=pl.BlockSpec((tm, tn), lambda j, i: (i, j)),
            scratch_shapes=[pltpu.VMEM((tn, nfeat), jnp.float32)],
        ),
        compiler_params=pltpu.CompilerParams(
            # Class axis: independent -> megacore-shardable.
            # Batch axis: sequential so the cn cache (written at i==0) is valid.
            dimension_semantics=("parallel", "arbitrary"),
            vmem_limit_bytes=48 * 1024 * 1024,
        ),
    )(x, centers)


class CocoLinearJax:
    """Mirror of the PyTorch module; centers initialized with randn-like values."""

    def __init__(self, nfeat, nclass, alpha, key):
        self.alpha = alpha
        self.centers = jax.random.normal(key, (nclass, nfeat), dtype=jnp.float32)

    def __call__(self, x, y=None):
        # y is accepted but unused, matching the PyTorch forward.
        return coco_linear(x, self.centers, self.alpha)


def _reference(x, centers, alpha):
    cn = centers / jnp.maximum(
        jnp.linalg.norm(centers, axis=1, keepdims=True), _EPS)
    xn = alpha * (x / jnp.maximum(
        jnp.linalg.norm(x, axis=1, keepdims=True), _EPS))
    return xn @ cn.T


if __name__ == "__main__":
    key = jax.random.PRNGKey(0)
    k_c, k_x, k_c2, k_x2 = jax.random.split(key, 4)

    # Small case (single block, grid = (1, 1)), matching the module's 2-D layout.
    batch, nfeat, nclass, alpha = 8, 32, 16, 6.25
    module = CocoLinearJax(nfeat=nfeat, nclass=nclass, alpha=alpha, key=k_c)
    x = jax.random.normal(k_x, (batch, nfeat), dtype=jnp.float32)
    y = jnp.zeros((batch,), dtype=jnp.int32)  # unused label arg

    logits = module(x, y)
    jax.block_until_ready(logits)
    ref = _reference(x, module.centers, alpha)
    assert logits.shape == (batch, nclass)
    assert jnp.allclose(logits, ref, atol=1e-4, rtol=1e-4)

    # Tiled case exercising the 2-D grid, the cn VMEM cache and megacore split
    # (grid = (2 class tiles, 2 batch tiles)).
    b2, f2, c2 = 512, 256, 1024
    centers2 = jax.random.normal(k_c2, (c2, f2), dtype=jnp.float32)
    x2 = jax.random.normal(k_x2, (b2, f2), dtype=jnp.float32)
    logits2 = coco_linear(x2, centers2, alpha)
    jax.block_until_ready(logits2)
    ref2 = _reference(x2, centers2, alpha)
    assert logits2.shape == (b2, c2)
    assert jnp.allclose(logits2, ref2, atol=1e-4, rtol=1e-4)

    print("KERNEL_OK")
</pallas_src>

<mosaic_0001>
module attributes {stable_mosaic.version = 11 : i64} {
  func.func @_coco_kernel(%arg0: i32, %arg1: i32, %arg2: memref<8x32xf32, #tpu.memory_space<vmem>>, %arg3: memref<16x32xf32, #tpu.memory_space<vmem>>, %arg4: memref<8x16xf32, #tpu.memory_space<vmem>>, %arg5: memref<16x32xf32, #tpu.memory_space<vmem>>) attributes {dimension_semantics = [#tpu.dimension_semantics<parallel>, #tpu.dimension_semantics<arbitrary>], iteration_bounds = array<i64: 1, 1>, scalar_prefetch = 0 : i64, scratch_operands = 1 : i64, tpu.core_type = #tpu.core_type<tc>, window_params = [{transform_indices = @transform_0, window_bounds = array<i64: 8, 32>}, {transform_indices = @transform_1, window_bounds = array<i64: 16, 32>}, {transform_indices = @transform_2, window_bounds = array<i64: 8, 16>}]} {
    %c0_i32 = arith.constant 0 : i32
    %0 = arith.cmpi eq, %arg1, %c0_i32 : i32
    %1 = arith.extui %0 : i1 to i32
    %c0_i32_0 = arith.constant 0 : i32
    %2 = arith.cmpi ne, %1, %c0_i32_0 : i32
    scf.if %2 {
      %c0_9 = arith.constant 0 : index
      %c0_10 = arith.constant 0 : index
      %17 = vector.load %arg3[%c0_9, %c0_10] : memref<16x32xf32, #tpu.memory_space<vmem>>, vector<16x32xf32>
      %18 = arith.mulf %17, %17 : vector<16x32xf32>
      %cst_11 = arith.constant dense<0.000000e+00> : vector<16xf32>
      %19 = vector.multi_reduction <add>, %18, %cst_11 [1] : vector<16x32xf32> to vector<16xf32>
      %20 = vector.shape_cast %19 : vector<16xf32> to vector<16x1xf32>
      %cst_12 = arith.constant 1.000000e-24 : f32
      %21 = vector.broadcast %cst_12 : f32 to vector<16x1xf32>
      %22 = arith.maximumf %20, %21 : vector<16x1xf32>
      %23 = math.rsqrt %22 : vector<16x1xf32>
      %24 = vector.broadcast %23 : vector<16x1xf32> to vector<16x32xf32>
      %25 = arith.mulf %17, %24 : vector<16x32xf32>
      %c0_13 = arith.constant 0 : index
      %c0_14 = arith.constant 0 : index
      %26 = vector.load %arg5[%c0_13, %c0_14] : memref<16x32xf32, #tpu.memory_space<vmem>>, vector<16x32xf32>
      tpu.vector_store %arg5[%c0_13, %c0_14], %25 {strides = array<i32>} : memref<16x32xf32, #tpu.memory_space<vmem>>, vector<16x32xf32>,
    } else {
    }
    %c0 = arith.constant 0 : index
    %c0_1 = arith.constant 0 : index
    %3 = vector.load %arg2[%c0, %c0_1] : memref<8x32xf32, #tpu.memory_space<vmem>>, vector<8x32xf32>
    %4 = arith.mulf %3, %3 : vector<8x32xf32>
    %cst = arith.constant dense<0.000000e+00> : vector<8xf32>
    %5 = vector.multi_reduction <add>, %4, %cst [1] : vector<8x32xf32> to vector<8xf32>
    %6 = vector.shape_cast %5 : vector<8xf32> to vector<8x1xf32>
    %cst_2 = arith.constant 1.000000e-24 : f32
    %7 = vector.broadcast %cst_2 : f32 to vector<8x1xf32>
    %8 = arith.maximumf %6, %7 : vector<8x1xf32>
    %9 = math.rsqrt %8 : vector<8x1xf32>
    %cst_3 = arith.constant 6.250000e+00 : f32
    %10 = vector.broadcast %cst_3 : f32 to vector<8x1xf32>
    %11 = arith.mulf %10, %9 : vector<8x1xf32>
    %12 = vector.broadcast %11 : vector<8x1xf32> to vector<8x32xf32>
    %13 = arith.mulf %3, %12 : vector<8x32xf32>
    %c0_4 = arith.constant 0 : index
    %c0_5 = arith.constant 0 : index
    %14 = vector.load %arg5[%c0_4, %c0_5] : memref<16x32xf32, #tpu.memory_space<vmem>>, vector<16x32xf32>
    %cst_6 = arith.constant dense<0.000000e+00> : vector<8x16xf32>
    %15 = tpu.matmul %13, %14, %cst_6 {dimension_numbers = #tpu.dot_dimension_numbers<[1], [1], [0], [0], [0, 0, 1, 0], [], []>} : vector<8x32xf32>, vector<16x32xf32>, vector<8x16xf32> -> vector<8x16xf32>
    %c0_7 = arith.constant 0 : index
    %c0_8 = arith.constant 0 : index
    %16 = vector.load %arg4[%c0_7, %c0_8] : memref<8x16xf32, #tpu.memory_space<vmem>>, vector<8x16xf32>
    tpu.vector_store %arg4[%c0_7, %c0_8], %15 {strides = array<i32>} : memref<8x16xf32, #tpu.memory_space<vmem>>, vector<8x16xf32>,
    return
  }
  func.func @transform_0(%arg0: i32, %arg1: i32) -> (i32, i32) {
    %c0_i32 = arith.constant 0 : i32
    %c0_i32_0 = arith.constant 0 : i32
    return %arg1, %c0_i32 : i32, i32
  }
  func.func @transform_1(%arg0: i32, %arg1: i32) -> (i32, i32) {
    %c0_i32 = arith.constant 0 : i32
    %c0_i32_0 = arith.constant 0 : i32
    return %arg0, %c0_i32 : i32, i32
  }
  func.func @transform_2(%arg0: i32, %arg1: i32) -> (i32, i32) {
    %c0_i32 = arith.constant 0 : i32
    return %arg1, %arg0 : i32, i32
  }
}

</mosaic_0001>

<bundles_post_ra>
// kernel: tpu_custom_call.1
= control target key start
LH: loop header
LB: loop body
LE: loop exit
PB: predicated region body
PF: predicated region fallthrough
CT: control target
= control target key end

     0   :  { %7 = vsyncpa [#allocation4], 0  ;;  %s347_s0 = inlined_call_operand.hbm [shape: f32[8,32], index: 0, kind: input, shape index: {}]   ;;  %s348_s1 = inlined_call_operand.hbm [shape: f32[16,32], index: 1, kind: input, shape index: {}]   ;;  %s349_s2 = inlined_call_operand.hbm [shape: f32[8,16], index: 2, kind: output, shape index: {}]  }
   0x1   :  { %8 = vsyncpa [#allocation7], 0 }
   0x2   :  { %9 = vsyncpa [#allocation5], 0  ;;  %s273_s9 = smov [#allocation3]   ;;  %s274_s11 = smov [#allocation6]  }
   0x3   :  { %s16_s10 = sshll.u32 %s273_s9, 4  ;;  %s25_s12 = sshll.u32 %s274_s11, 4  ;;  %s17_s10 = int_to_ptr.vmem [resolvable:$true] %s16_s10  ;;  %s296_s12 = int_to_ptr.vmem [resolvable:$true] %s25_s12 }
   0x4   :  { %s201_s15 = scalar_lea.hbm %s347_s0, 128 }
   0x5   :  { %p202_p0 = scmp.ne.s32.totalorder %s347_s0, %s201_s15  ;;  %p205_p1 = scmp.lt.u32.totalorder %s201_s15, %s347_s0 }
   0x7   :  { %p207_p2 = pnand %p205_p1, %p202_p0 }
   0x9   :  { %210 = shalt.err (!%p207_p2)
}
   0xa   :  { %s211_s20 = scalar_lea.vmem %s17_s10, 128  ;;  %p216_p4 = scmp.lt.s32.totalorder %s17_s10, %s17_s10 }
   0xb   :  { %p212_p3 = scmp.ne.s32.totalorder %s17_s10, %s211_s20  ;;  %p217_p5 = scmp.lt.s32.totalorder %s211_s20, %s211_s20 }
   0xd   :  { %p218_p6 = por %p217_p5, %p216_p4 }
   0xf   :  { %p219_p7 = pnand %p218_p6, %p212_p3 }
  0x11   :  { %222 = shalt.err (!%p219_p7)
}
  0x12   :  { %19 = dma.hbm_to_vmem [thread:$0]  %s347_s0, 128, %s17_s10, [#allocation4]  }
  0x13   :  { %s223_s25 = scalar_lea.hbm %s348_s1, 256 }
  0x14   :  { %p224_p8 = scmp.ne.s32.totalorder %s348_s1, %s223_s25  ;;  %p227_p9 = scmp.lt.u32.totalorder %s223_s25, %s348_s1 }
  0x16   :  { %p229_p10 = pnand %p227_p9, %p224_p8 }
  0x18   :  { %232 = shalt.err (!%p229_p10)
}
  0x19   :  { %s233_s30 = scalar_lea.vmem %s296_s12, 256  ;;  %p238_p12 = scmp.lt.s32.totalorder %s296_s12, %s296_s12 }
  0x1a   :  { %p234_p11 = scmp.ne.s32.totalorder %s296_s12, %s233_s30  ;;  %p239_p13 = scmp.lt.s32.totalorder %s233_s30, %s233_s30 }
  0x1c   :  { %p240_p0 = por %p239_p13, %p238_p12 }
  0x1e   :  { %p241_p1 = pnand %p240_p0, %p234_p11 }
  0x20   :  { %244 = shalt.err (!%p241_p1)
}
  0x21   :  { %s275_s0 = smov 128   ;;  %s276_s3 = smov 8  }
  0x22   :  { %31 = dma.hbm_to_vmem [thread:$0]  %s348_s1, 256, %s296_s12, [#allocation7], %s275_s0, %s275_s0, %s276_s3  }
  0x23   :  { %267 = dma.done.wait [#allocation4], 128  }
  0x24   :  { %268 = vsyncadd [#allocation4], 4294967168 }
  0x25   :  { %269 = dma.done.wait [#allocation7], 256  }
  0x26   :  { %270 = vsyncadd [#allocation7], 4294967040  ;;  %v42_v0 = vld [vmem:[#allocation6] sm:$0xff]  ;;  %vm46_vm0 = vcmask 261120   ;;  %v43_v1 = vld [vmem:[#allocation6 + $0x8] sm:$0xff]  ;;  %v277_v9 = vmov 0.0|0.0  }
  0x27   :  { %v61_v2 = vld [vmem:[#allocation3] sm:$0xff]  ;;  %v44_v3 = vmul.f32 %v42_v0, %v42_v0  ;;  %v45_v4 = vmul.f32 %v43_v1, %v43_v1  ;;  %183 = vmatprep.subr.bf16.mxu0 %v277_v9  ;;  %vm278_vm1 = vmmov 0   ;;  %v279_v10 = vmov 0.0   ;;  %vm185_vm2 = vmpackc.low %vm46_vm0, %vm46_vm0  ;;  %s280_s1 = smov [#allocation8]  }
  0x28   :  { %v62_v5 = vmul.f32 %v61_v2, %v61_v2  ;;  %180 = vmatprep.mubr.msk.f32.mxu0 %vm278_vm1, %v279_v10  ;;  %s160_s6 = sshll.u32 %s280_s1, 4  ;;  %vm152_vm3 = vcmask 130048   ;;  %s161_s6 = int_to_ptr.vmem [resolvable:$true] %s160_s6 }
  0x29   :  { %v47_v6 = vsel %vm46_vm0, %v44_v3, 0.0  ;;  %v50_v8 = vsel %vm46_vm0, %v45_v4, 0.0  ;;  %s245_s7 = scalar_lea.vmem %s161_s6, 128  ;;  %p250_p3 = scmp.lt.s32.totalorder %s161_s6, %s161_s6 }
  0x2a   :  { %v64_v7 = vsel %vm46_vm0, %v62_v5, 0.0  ;;  %48 = vadd.xlane.f32.xlu0 %v47_v6  ;;  %p246_p2 = scmp.ne.s32.totalorder %s161_s6, %s245_s7  ;;  %p251_p4 = scmp.lt.s32.totalorder %s245_s7, %s245_s7 }
  0x2b   :  { %65 = vadd.xlane.f32.xlu1 %v64_v7 }
  0x2c   :  { %p252_p5 = por %p251_p4, %p250_p3 }
  0x2e   :  { %51 = vadd.xlane.f32.xlu0 %v50_v8  ;;  %p253_p6 = pnand %p252_p5, %p246_p2 }
  0xb7   :  { %v49_v11 = vpop.xlane.xlu0 %48 }
  0xb8   :  { %v53_v12 = vmax.f32 %v49_v11, 1e-24  ;;  %v66_v15 = vpop.xlane.xlu1 %65 }
  0xb9   :  { %v67_v16 = vmax.f32 %v66_v15, 1e-24 }
  0xba   :  { %195 = vrsqrt.f32 %v53_v12 }
  0xbb   :  { %v52_v13 = vpop.xlane.xlu0 %51 }
  0xbc   :  { %v54_v14 = vmax.f32 %v52_v13, 1e-24 }
  0xbe   :  { %197 = vrsqrt.f32 %v54_v14 }
  0xbf   :  { %199 = vrsqrt.f32 %v67_v16 }
  0xc4   :  { %v196_v17 = vpop.eup %195 }
  0xc5   :  { %v57_v18 = vmul.f32 %v196_v17, %v42_v0 }
  0xc7   :  { %59 = vst.msk [vmem:[#allocation2] sm:$0xff] %vm46_vm0, %v57_v18 }
  0xc8   :  { %v198_v19 = vpop.eup %197 }
  0xc9   :  { %v58_v20 = vmul.f32 %v198_v19, %v43_v1  ;;  %v200_v21 = vpop.eup %199 }
  0xca   :  { %v69_v25 = vmul.f32 6.25, %v200_v21 }
  0xcb   :  { %60 = vst.msk [vmem:[#allocation2 + $0x8] sm:$0xff] %vm46_vm0, %v58_v20 }
  0xcc   :  { %v70_v26 = vmul.f32 %v69_v25, %v61_v2 }
  0xce   :  { %v71_v22 = vld [vmem:[#allocation2] sm:$0xff] }
  0xd2   :  { %v72_v23 = vld [vmem:[#allocation2 + $0x8] sm:$0xff] }
  0xd3   :  { %v184_v24 = vpack.c.bf16 %v72_v23, %v71_v22 }
  0xd5   :  { %186 = vmatpush3.bf16.xpose.msk.msra.mxu0 %vm185_vm2, %v184_v24 }
  0xdc   :  { %181 = vmatmul.mubr.msk.f32.vlgmr.msra.gmra.mrb[0].mxu0 %vm46_vm0, %v70_v26 }
 0x1af   :  { %v148_v27 = vpop.f32.mrb[0].mxu0 }
 0x1b0   :  { %v182_v28 = vpop.f32.mrb[1].mxu0  ;;  %153 = vst.msk [vmem:[#allocation8] sm:$0xff] %vm152_vm3, %v148_v27 }
 0x1b1   :  { %256 = shalt.err (!%p253_p6)
}
 0x1b2   :  { %s257_s10 = scalar_lea.hbm %s349_s2, 128 }
 0x1b3   :  { %p258_p7 = scmp.ne.s32.totalorder %s349_s2, %s257_s10  ;;  %p261_p8 = scmp.lt.u32.totalorder %s257_s10, %s349_s2 }
 0x1b5   :  { %p263_p9 = pnand %p261_p8, %p258_p7 }
 0x1b7   :  { %266 = shalt.err (!%p263_p9)
}
 0x1b8   :  { %163 = dma.vmem_to_hbm [thread:$0]  %s161_s6, 128, %s349_s2, [#allocation5]  }
 0x1b9   :  { %271 = dma.done.wait [#allocation5], 128  }
 0x1ba   :  { %272 = vsyncadd [#allocation5], 4294967168 }
 0x1bb   :  { %167 = vsyncpa [#allocation4], 1 }
 0x1bc   :  { %168 = vsyncpa [#allocation7], 1 }
 0x1bd   :  { %169 = vsyncpa [#allocation5], 1 }

</bundles_post_ra>
